<compile_context>
chip_gen: v7x
topology: tpu7x:2x2x1
jax: 0.10.0
libtpu: 0.0.40
codegen_flags: <defaults>
</compile_context>

<pallas_src>
import functools

import jax
import jax.numpy as jnp
from jax.experimental import pallas as pl
from jax.experimental.pallas import tpu as pltpu

BN_EPS = 1e-3  # ERFNet uses BatchNorm2d(eps=1e-3)


# ----------------------------------------------------------------------------
# Pallas kernel: fused 4-tap GEMM accumulation + shift + ReLU
# ----------------------------------------------------------------------------
def _conv_down_kernel(xs_ref, w_ref, sh_ref, o_ref, *, TH, Wo, Cin4, Cout):
    """xs_ref : (1, Ho+1, Wo+1, Cin4)  bf16   space-to-depth'ed padded activation (per batch)
       w_ref  : (2, 2, Cin4, Cout)     bf16   2x2-tap weight with BN scale folded in
       sh_ref : (1, Cout)              f32    per-channel shift (bias/BN folded)
       o_ref  : (1, TH, Wo, Cout)      f32    output row tile
    """
    t = pl.program_id(1)
    r0 = t * TH  # first output row of this tile

    acc = jnp.zeros((TH * Wo, Cout), jnp.float32)
    for dr in range(2):
        for dc in range(2):
            xw = xs_ref[0, pl.ds(r0 + dr, TH), pl.ds(dc, Wo), :]      # (TH, Wo, Cin4)
            acc = acc + jnp.dot(
                xw.reshape(TH * Wo, Cin4),
                w_ref[dr, dc],
                preferred_element_type=jnp.float32,
            )

    y = jnp.maximum(acc + sh_ref[...], 0.0)                            # shift + ReLU
    o_ref[...] = y.reshape(1, TH, Wo, Cout).astype(o_ref.dtype)


def _pick_row_tile(N, Ho, Wo):
    """Largest divisor of Ho giving <= ~2048 output pixels per tile; if batch==1, cap at
    Ho//2 so the grid still has >=2 'parallel' steps (both v7x TensorCores busy)."""
    max_rows = max(1, 2048 // max(Wo, 1))
    cap = Ho if N > 1 else max(1, Ho // 2) if Ho > 1 else 1
    cap = min(cap, max_rows)
    th = 1
    for d in range(1, Ho + 1):
        if Ho % d == 0 and d <= cap:
            th = d
    return th


# ----------------------------------------------------------------------------
# Forward (whole thing jitted once)
# ----------------------------------------------------------------------------
def _conv_downsampler_forward_impl(x_nchw, conv_w, conv_b, bn_gamma, bn_beta, bn_mean, bn_var):
    N, Cin, H, W = x_nchw.shape
    Cout = conv_w.shape[0]
    assert conv_w.shape[1:] == (Cin, 3, 3), conv_w.shape
    Ho = (H - 1) // 2 + 1
    Wo = (W - 1) // 2 + 1
    Cin4 = 4 * Cin

    # --- activation prep: NCHW -> NHWC, pad(1), 2x2 space-to-depth, bf16 -------------------
    x = jnp.transpose(x_nchw, (0, 2, 3, 1)).astype(jnp.float32)       # (N, H, W, Cin)
    pad_b = 2 * Ho + 1 - H                                            # >= 1
    pad_r = 2 * Wo + 1 - W
    xp = jnp.pad(x, ((0, 0), (1, pad_b), (1, pad_r), (0, 0)))         # (N, 2(Ho+1), 2(Wo+1), Cin)
    xs = xp.reshape(N, Ho + 1, 2, Wo + 1, 2, Cin)
    xs = xs.transpose(0, 1, 3, 2, 4, 5).reshape(N, Ho + 1, Wo + 1, Cin4)
    xs = xs.astype(jnp.bfloat16)

    # --- weight prep: fold BN scale, map 3x3/stride-2 taps onto 2x2 space-to-depth taps ----
    scale = bn_gamma * jax.lax.rsqrt(bn_var + BN_EPS)                 # (Cout,)
    shift = ((conv_b - bn_mean) * scale + bn_beta).astype(jnp.float32).reshape(1, Cout)

    w_t = jnp.transpose(conv_w, (2, 3, 1, 0)) * scale[None, None, None, :]   # (3,3,Cin,Cout)
    w_pad = jnp.pad(w_t, ((0, 1), (0, 1), (0, 0), (0, 0)))                   # (4,4,Cin,Cout)
    w_s2d = w_pad.reshape(2, 2, 2, 2, Cin, Cout).transpose(0, 2, 1, 3, 4, 5)
    w_s2d = w_s2d.reshape(2, 2, Cin4, Cout).astype(jnp.bfloat16)

    # --- pallas call ------------------------------------------------------------------------
    TH = _pick_row_tile(N, Ho, Wo)
    grid = (N, Ho // TH)

    xs_block_bytes = (Ho + 1) * (Wo + 1) * Cin4 * 2
    w_bytes = 2 * 2 * Cin4 * Cout * 2
    sh_bytes = Cout * 4
    out_block_bytes = TH * Wo * Cout * 4
    need = 2 * (xs_block_bytes + w_bytes + sh_bytes + out_block_bytes) + (2 << 20)
    vmem_limit = int(min(need, 64 << 20)) if need > (16 << 20) else None

    kernel = functools.partial(_conv_down_kernel, TH=TH, Wo=Wo, Cin4=Cin4, Cout=Cout)

    out = pl.pallas_call(
        kernel,
        grid=grid,
        in_specs=[
            # activation block depends only on the batch index -> not re-fetched across row tiles
            pl.BlockSpec((1, Ho + 1, Wo + 1, Cin4), lambda n, t: (n, 0, 0, 0)),
            pl.BlockSpec((2, 2, Cin4, Cout), lambda n, t: (0, 0, 0, 0)),
            pl.BlockSpec((1, Cout), lambda n, t: (0, 0)),
        ],
        out_specs=pl.BlockSpec((1, TH, Wo, Cout), lambda n, t: (n, t, 0, 0)),
        out_shape=jax.ShapeDtypeStruct((N, Ho, Wo, Cout), jnp.float32),
        compiler_params=pltpu.CompilerParams(
            dimension_semantics=("parallel", "parallel"),
            vmem_limit_bytes=vmem_limit,
        ),
    )(xs, w_s2d, shift)

    return jnp.transpose(out, (0, 3, 1, 2))                           # NHWC -> NCHW


conv_downsampler_forward = jax.jit(_conv_downsampler_forward_impl)


# ----------------------------------------------------------------------------
# Pure-JAX reference (f32) for correctness
# ----------------------------------------------------------------------------
def _reference_forward(x, w, b, gamma, beta, mean, var):
    y = jax.lax.conv_general_dilated(
        x, w, window_strides=(2, 2), padding=((1, 1), (1, 1)),
        dimension_numbers=("NCHW", "OIHW", "NCHW"))
    y = y + b[None, :, None, None]
    inv = gamma / jnp.sqrt(var + BN_EPS)
    y = (y - mean[None, :, None, None]) * inv[None, :, None, None] + beta[None, :, None, None]
    return jnp.maximum(y, 0.0)


# ----------------------------------------------------------------------------
if __name__ == "__main__":
    key = jax.random.PRNGKey(0)
    k1, k2, k3 = jax.random.split(key, 3)

    N, Cin, H, W = 2, 4, 16, 16
    Cout = 128  # lane-dense output channel count (multiple of 128 -> unmasked stores)

    x = jax.random.normal(k1, (N, Cin, H, W), jnp.float32)
    fan_in = Cin * 3 * 3
    conv_w = jax.random.normal(k2, (Cout, Cin, 3, 3), jnp.float32) * (1.0 / (fan_in ** 0.5))
    conv_b = jax.random.normal(k3, (Cout,), jnp.float32) * 0.1

    # non-trivial eval-mode BN parameters / running statistics
    bn_gamma = jnp.linspace(0.5, 1.5, Cout, dtype=jnp.float32)
    bn_beta = jnp.linspace(-0.2, 0.2, Cout, dtype=jnp.float32)
    bn_mean = jnp.linspace(-0.1, 0.1, Cout, dtype=jnp.float32)
    bn_var = jnp.linspace(0.5, 2.0, Cout, dtype=jnp.float32)

    out = jax.block_until_ready(
        conv_downsampler_forward(x, conv_w, conv_b, bn_gamma, bn_beta, bn_mean, bn_var))

    assert out.shape == (N, Cout, H // 2, W // 2), out.shape
    assert bool(jnp.all(jnp.isfinite(out)))

    ref = _reference_forward(x, conv_w, conv_b, bn_gamma, bn_beta, bn_mean, bn_var)
    max_err = float(jnp.max(jnp.abs(out - ref)))
    ref_mag = float(jnp.max(jnp.abs(ref))) + 1e-6
    assert max_err / ref_mag < 0.05, (max_err, ref_mag)  # bf16 operands, f32 accumulation

    print("KERNEL_OK")
</pallas_src>

<mosaic_0001>
module attributes {stable_mosaic.version = 11 : i64} {
  func.func @_conv_down_kernel(%arg0: i32, %arg1: i32, %arg2: memref<1x9x9x16xbf16, #tpu.memory_space<vmem>>, %arg3: memref<2x2x16x128xbf16, #tpu.memory_space<vmem>>, %arg4: memref<1x128xf32, #tpu.memory_space<vmem>>, %arg5: memref<1x8x8x128xf32, #tpu.memory_space<vmem>>) attributes {dimension_semantics = [#tpu.dimension_semantics<parallel>, #tpu.dimension_semantics<parallel>], iteration_bounds = array<i64: 2, 1>, scalar_prefetch = 0 : i64, scratch_operands = 0 : i64, tpu.core_type = #tpu.core_type<tc>, window_params = [{transform_indices = @transform_0, window_bounds = array<i64: 1, 9, 9, 16>}, {pipeline_mode = #tpu.pipeline_mode<synchronous>, transform_indices = @transform_1, window_bounds = array<i64: 2, 2, 16, 128>}, {pipeline_mode = #tpu.pipeline_mode<synchronous>, transform_indices = @transform_2, window_bounds = array<i64: 1, 128>}, {transform_indices = @transform_3, window_bounds = array<i64: 1, 8, 8, 128>}]} {
    %c8_i32 = arith.constant 8 : i32
    %0 = arith.muli %arg1, %c8_i32 : i32
    %cst = arith.constant 0.000000e+00 : f32
    %1 = vector.broadcast %cst : f32 to vector<64x128xf32>
    %c0_i32 = arith.constant 0 : i32
    %2 = arith.addi %0, %c0_i32 : i32
    %c0 = arith.constant 0 : index
    %3 = arith.index_cast %2 : i32 to index
    %c0_0 = arith.constant 0 : index
    %c0_1 = arith.constant 0 : index
    %4 = vector.load %arg2[%c0, %3, %c0_0, %c0_1] : memref<1x9x9x16xbf16, #tpu.memory_space<vmem>>, vector<1x8x8x16xbf16>
    %5 = vector.shape_cast %4 : vector<1x8x8x16xbf16> to vector<8x8x16xbf16>
    %6 = vector.shape_cast %5 : vector<8x8x16xbf16> to vector<64x16xbf16>
    %c0_2 = arith.constant 0 : index
    %c0_3 = arith.constant 0 : index
    %c0_4 = arith.constant 0 : index
    %c0_5 = arith.constant 0 : index
    %7 = vector.load %arg3[%c0_2, %c0_3, %c0_4, %c0_5] : memref<2x2x16x128xbf16, #tpu.memory_space<vmem>>, vector<1x1x16x128xbf16>
    %8 = vector.shape_cast %7 : vector<1x1x16x128xbf16> to vector<16x128xbf16>
    %cst_6 = arith.constant dense<0.000000e+00> : vector<64x128xf32>
    %9 = tpu.matmul %6, %8, %cst_6 {dimension_numbers = #tpu.dot_dimension_numbers<[1], [0], [0], [1], [0, 0, 1, 1], [], []>} : vector<64x16xbf16>, vector<16x128xbf16>, vector<64x128xf32> -> vector<64x128xf32>
    %10 = arith.addf %1, %9 : vector<64x128xf32>
    %c0_i32_7 = arith.constant 0 : i32
    %11 = arith.addi %0, %c0_i32_7 : i32
    %c0_8 = arith.constant 0 : index
    %12 = arith.index_cast %11 : i32 to index
    %c1 = arith.constant 1 : index
    %c0_9 = arith.constant 0 : index
    %13 = vector.load %arg2[%c0_8, %12, %c1, %c0_9] : memref<1x9x9x16xbf16, #tpu.memory_space<vmem>>, vector<1x8x8x16xbf16>
    %14 = vector.shape_cast %13 : vector<1x8x8x16xbf16> to vector<8x8x16xbf16>
    %15 = vector.shape_cast %14 : vector<8x8x16xbf16> to vector<64x16xbf16>
    %c0_10 = arith.constant 0 : index
    %c1_11 = arith.constant 1 : index
    %c0_12 = arith.constant 0 : index
    %c0_13 = arith.constant 0 : index
    %16 = vector.load %arg3[%c0_10, %c1_11, %c0_12, %c0_13] : memref<2x2x16x128xbf16, #tpu.memory_space<vmem>>, vector<1x1x16x128xbf16>
    %17 = vector.shape_cast %16 : vector<1x1x16x128xbf16> to vector<16x128xbf16>
    %cst_14 = arith.constant dense<0.000000e+00> : vector<64x128xf32>
    %18 = tpu.matmul %15, %17, %cst_14 {dimension_numbers = #tpu.dot_dimension_numbers<[1], [0], [0], [1], [0, 0, 1, 1], [], []>} : vector<64x16xbf16>, vector<16x128xbf16>, vector<64x128xf32> -> vector<64x128xf32>
    %19 = arith.addf %10, %18 : vector<64x128xf32>
    %c1_i32 = arith.constant 1 : i32
    %20 = arith.addi %0, %c1_i32 : i32
    %c0_15 = arith.constant 0 : index
    %21 = arith.index_cast %20 : i32 to index
    %c0_16 = arith.constant 0 : index
    %c0_17 = arith.constant 0 : index
    %22 = vector.load %arg2[%c0_15, %21, %c0_16, %c0_17] : memref<1x9x9x16xbf16, #tpu.memory_space<vmem>>, vector<1x8x8x16xbf16>
    %23 = vector.shape_cast %22 : vector<1x8x8x16xbf16> to vector<8x8x16xbf16>
    %24 = vector.shape_cast %23 : vector<8x8x16xbf16> to vector<64x16xbf16>
    %c1_18 = arith.constant 1 : index
    %c0_19 = arith.constant 0 : index
    %c0_20 = arith.constant 0 : index
    %c0_21 = arith.constant 0 : index
    %25 = vector.load %arg3[%c1_18, %c0_19, %c0_20, %c0_21] : memref<2x2x16x128xbf16, #tpu.memory_space<vmem>>, vector<1x1x16x128xbf16>
    %26 = vector.shape_cast %25 : vector<1x1x16x128xbf16> to vector<16x128xbf16>
    %cst_22 = arith.constant dense<0.000000e+00> : vector<64x128xf32>
    %27 = tpu.matmul %24, %26, %cst_22 {dimension_numbers = #tpu.dot_dimension_numbers<[1], [0], [0], [1], [0, 0, 1, 1], [], []>} : vector<64x16xbf16>, vector<16x128xbf16>, vector<64x128xf32> -> vector<64x128xf32>
    %28 = arith.addf %19, %27 : vector<64x128xf32>
    %c1_i32_23 = arith.constant 1 : i32
    %29 = arith.addi %0, %c1_i32_23 : i32
    %c0_24 = arith.constant 0 : index
    %30 = arith.index_cast %29 : i32 to index
    %c1_25 = arith.constant 1 : index
    %c0_26 = arith.constant 0 : index
    %31 = vector.load %arg2[%c0_24, %30, %c1_25, %c0_26] : memref<1x9x9x16xbf16, #tpu.memory_space<vmem>>, vector<1x8x8x16xbf16>
    %32 = vector.shape_cast %31 : vector<1x8x8x16xbf16> to vector<8x8x16xbf16>
    %33 = vector.shape_cast %32 : vector<8x8x16xbf16> to vector<64x16xbf16>
    %c1_27 = arith.constant 1 : index
    %c1_28 = arith.constant 1 : index
    %c0_29 = arith.constant 0 : index
    %c0_30 = arith.constant 0 : index
    %34 = vector.load %arg3[%c1_27, %c1_28, %c0_29, %c0_30] : memref<2x2x16x128xbf16, #tpu.memory_space<vmem>>, vector<1x1x16x128xbf16>
    %35 = vector.shape_cast %34 : vector<1x1x16x128xbf16> to vector<16x128xbf16>
    %cst_31 = arith.constant dense<0.000000e+00> : vector<64x128xf32>
    %36 = tpu.matmul %33, %35, %cst_31 {dimension_numbers = #tpu.dot_dimension_numbers<[1], [0], [0], [1], [0, 0, 1, 1], [], []>} : vector<64x16xbf16>, vector<16x128xbf16>, vector<64x128xf32> -> vector<64x128xf32>
    %37 = arith.addf %28, %36 : vector<64x128xf32>
    %c0_32 = arith.constant 0 : index
    %c0_33 = arith.constant 0 : index
    %38 = vector.load %arg4[%c0_32, %c0_33] : memref<1x128xf32, #tpu.memory_space<vmem>>, vector<1x128xf32>
    %39 = vector.broadcast %38 : vector<1x128xf32> to vector<64x128xf32>
    %40 = arith.addf %37, %39 : vector<64x128xf32>
    %cst_34 = arith.constant 0.000000e+00 : f32
    %41 = vector.broadcast %cst_34 : f32 to vector<64x128xf32>
    %42 = arith.maximumf %40, %41 : vector<64x128xf32>
    %43 = vector.shape_cast %42 : vector<64x128xf32> to vector<1x8x8x128xf32>
    %c0_35 = arith.constant 0 : index
    %c0_36 = arith.constant 0 : index
    %c0_37 = arith.constant 0 : index
    %c0_38 = arith.constant 0 : index
    %44 = vector.load %arg5[%c0_35, %c0_36, %c0_37, %c0_38] : memref<1x8x8x128xf32, #tpu.memory_space<vmem>>, vector<1x8x8x128xf32>
    tpu.vector_store %arg5[%c0_35, %c0_36, %c0_37, %c0_38], %43 {strides = array<i32>} : memref<1x8x8x128xf32, #tpu.memory_space<vmem>>, vector<1x8x8x128xf32>,
    return
  }
  func.func @transform_0(%arg0: i32, %arg1: i32) -> (i32, i32, i32, i32) {
    %c0_i32 = arith.constant 0 : i32
    %c0_i32_0 = arith.constant 0 : i32
    %c0_i32_1 = arith.constant 0 : i32
    %c0_i32_2 = arith.constant 0 : i32
    return %arg0, %c0_i32, %c0_i32_0, %c0_i32_1 : i32, i32, i32, i32
  }
  func.func @transform_1(%arg0: i32, %arg1: i32) -> (i32, i32, i32, i32) {
    %c0_i32 = arith.constant 0 : i32
    %c0_i32_0 = arith.constant 0 : i32
    %c0_i32_1 = arith.constant 0 : i32
    %c0_i32_2 = arith.constant 0 : i32
    %c0_i32_3 = arith.constant 0 : i32
    return %c0_i32, %c0_i32_0, %c0_i32_1, %c0_i32_2 : i32, i32, i32, i32
  }
  func.func @transform_2(%arg0: i32, %arg1: i32) -> (i32, i32) {
    %c0_i32 = arith.constant 0 : i32
    %c0_i32_0 = arith.constant 0 : i32
    %c0_i32_1 = arith.constant 0 : i32
    return %c0_i32, %c0_i32_0 : i32, i32
  }
  func.func @transform_3(%arg0: i32, %arg1: i32) -> (i32, i32, i32, i32) {
    %c0_i32 = arith.constant 0 : i32
    %c0_i32_0 = arith.constant 0 : i32
    %c0_i32_1 = arith.constant 0 : i32
    return %arg0, %arg1, %c0_i32, %c0_i32_0 : i32, i32, i32, i32
  }
}

</mosaic_0001>

<bundles_post_ra>
// kernel: _conv_downsampler_forward_impl.1
= control target key start
LH: loop header
LB: loop body
LE: loop exit
PB: predicated region body
PF: predicated region fallthrough
CT: control target
= control target key end

     0   :  { %8 = vsyncpa [#allocation3], 0  ;;  %s1617_s0 = inlined_call_operand.vmem [shape: bf16[2,9,9,16], index: 0, kind: input, shape index: {}]   ;;  %s1618_s1 = inlined_call_operand.vmem [shape: bf16[2,2,16,128], index: 1, kind: input, shape index: {}]   ;;  %s1619_s2 = inlined_call_operand.vmem [shape: f32[1,128], index: 2, kind: input, shape index: {}]   ;;  %s1620_s3 = inlined_call_operand.hbm [shape: f32[2,8,8,128], index: 3, kind: output, shape index: {}]  }
   0x1   :  { %10 = vsyncpa [#allocation3 + $0x1], 0  ;;  %s1347_s12 = smov 0   ;;  %s1349_s13 = smov 0  }
   0x2   :  { %s1351_s14 = smov 0   ;;  %s1353_s15 = smov 0  }
   0x3   :  { %s1355_s16 = smov 0   ;;  %s1357_s17 = smov 0  }
   0x4 LB: > { %s1010_s18 = sadd.s32 4294967295, %s1322_s17   ;;  %s1011_s19 = sadd.s32 4294967294, %s1322_s17   ;;  %s1322_s17 = sphi %s1357_s17, %s16_s17   ;;  %s1318_s16 = sphi %s1355_s16, %s1629_s16   ;;  %s1314_s15 = sphi %s1353_s15, %s1628_s15   ;;  %s1310_s14 = sphi %s1351_s14, %s1627_s14   ;;  %s1306_s13 = sphi %s1349_s13, %s1626_s13   ;;  %s1302_s12 = sphi %s1347_s12, %s1625_s12  }
   0x5   : > { %s28_s20 = sadd.s32 1, %s1318_s16  ;;  %s105_s21 = sadd.s32 1, %s1310_s14 }
   0x6   : > { %p30_p0 = scmp.ge.s32.totalorder %s28_s20, 2  ;;  %p115_p1 = scmp.ne.s32.totalorder %s1310_s14, %s1306_s13 }
   0x7   : > { %p116_p2 = scmp.eq.s32.totalorder %s1010_s18, 1  ;;  %p121_p3 = scmp.ne.s32.totalorder %s1306_s13, %s1302_s12 }
   0x8   : > { %s1631_s20 = smov (%p30_p0, %s28_s20), 0  ;;  %p122_p5 = scmp.eq.s32.totalorder %s1011_s19, 1 }
   0x9   : > { %p1387_p4 = por %p116_p2, %p115_p1  ;;  %s100_s23 = ssub.s32 %s1318_s16, %s1631_s20 }
   0xa   : > { %p1014_p6 = scmp.ge.s32.totalorder %s1322_s17, 1  ;;  %p103_p7 = scmp.eq.s32.totalorder %s100_s23, 0 }
   0xb   : > { %p1394_p8 = por %p122_p5, %p121_p3  ;;  %p154_p9 = scmp.lt.s32.totalorder %s1322_s17, 3 }
   0xc   : > { %s1400_s25 = scalar_select %p103_p7, %s1310_s14, %s105_s21  }
   0xd   : > { %p155_p10 = pnand %p1014_p6, %p154_p9 }
   0xe   : > { %v1232_v0 = vld [vmem:[%s1618_s1 + $0x10] sm:$0xff] (!%p155_p10)   ;;  %p178_p11 = scmp.lt.s32.totalorder (!%p155_p10), %s1314_s15, 1  ;;  %v1235_v1 = vld [vmem:[%s1618_s1 + $0x8] sm:$0xff] (!%p155_p10)   ;;  %v1413_v2 = vld [vmem:[%s1618_s1] sm:$0xff] (!%p155_p10)   ;;  %vm343_vm0 = vcmask (!%p155_p10), 130048   ;;  %s175_s18 = sand.u32 (!%p155_p10), 1, %s1306_s13  }
   0xf   : > { %158 = sbr.rel (%p155_p10) target bundleno = 318 (0x13e), region = 32  ;;  %1130 = vmatprep.subr.bf16.mxu0 (!%p155_p10), %v1232_v0  ;;  %1110 = vmatprep.subr.bf16.mxu1 (!%p155_p10), %v1235_v1  ;;  %v1239_v3 = vld [vmem:[%s1618_s1 + $0x18] sm:$0xff] (!%p155_p10)   ;;  %vm207_vm1 = vsmask.f32 (!%p155_p10), 3328  ;;  %vm208_vm2 = vsmask.f32 (!%p155_p10), 7440 }
  0x10   : > { %1131 = vmatpush3.bf16.msra.mxu0 (!%p155_p10), %v1232_v0  ;;  %1111 = vmatpush3.bf16.msra.mxu1 (!%p155_p10), %v1235_v1  ;;  %vm1455_vm3 = vmor (!%p155_p10), %vm207_vm1, %vm208_vm2  ;;  %s1015_s23 = sshll.u32 (!%p155_p10), %s175_s18, 6  ;;  %s1089_s27 = sshll.u32 (!%p155_p10), %s1314_s15, 10 }
  0x11   : > { %1120 = vmatprep.subr.bf16.mxu1 (!%p155_p10), %v1413_v2  ;;  %1140 = vmatprep.subr.bf16.mxu0 (!%p155_p10), %v1239_v3  ;;  %s177_s26 = scalar_lea.vmem (!%p155_p10), [#allocation2], %s1015_s23  ;;  %s1565_s4 = scalar_lea.hbm (!%p155_p10), %s1620_s3, %s1089_s27 }
  0x12   : > { %s931_s28 = sshll.u32 (!%p155_p10), %s177_s26, 4  ;;  %s1567_s28 = int_to_ptr.vmem [resolvable:$true] %s931_s28 }
  0x13   : > { %s1244_s5 = scalar_lea.vmem (!%p155_p10), %s1567_s28, 1024 }
  0x14   : > { %p1245_p12 = scmp.ne.s32.totalorder (!%p155_p10), %s1567_s28, %s1244_s5 }
  0x16   : > { %s179_s30 = scalar_select %p178_p11, %s1314_s15, 1 }
  0x17   : > { %s1571_s15 = scalar_lea.sflag [#allocation3], %s175_s18  ;;  %p1246_p13 = pnand %p1245_p12, %p1387_p4 }
  0x18   : > { %s1174_s6 = smul.u32 72, %s179_s30 }
  0x19   : > { %p1247_p0 = pneg %p1246_p13 }
  0x1a   : > { %s1422_s11 = scalar_lea.vmem %s1617_s0, %s1174_s6  ;;  %s1324_s6 = smov [#allocation2]  }
  0x1b   : > { %v1233_v4 = vld [vmem:[%s1422_s11 + $0x8] ss:$8 sps:$4 sm:$0xff]   ;;  %v1234_v5 = vld [vmem:[%s1422_s11 + $0x18] ss:$8 sps:$4 sm:$0xff]   ;;  %v199_v9 = vld [vmem:[%s1422_s11 + $0x4] sm:$0x1] }
  0x1c   : > { %1132 = vmatprep.mubr.msk.bf16.mxu0 %vm343_vm0, %v1233_v4  ;;  %v1236_v6 = vld [vmem:[%s1422_s11 + $0x28] ss:$8 sps:$4 sm:$0xff]   ;;  %v1430_v7 = vld [vmem:[%s1422_s11] sm:$0xf]  ;;  %v200_v10 = vld [vmem:[%s1422_s11 + $0xc] sm:$0x1] }
  0x1d   : > { %1133 = vmatmul.mubr.msk.bf16.vlgmr.msra.gmra.mrb[0].mxu0 %vm343_vm0, %v1234_v5  ;;  %v1433_v8 = vld [vmem:[%s1422_s11 + $0x8] sm:$0xf]  ;;  %v211_v11 = vshrl.u32 %v1430_v7, 16  ;;  %v214_v12 = vshll.u32 %v1430_v7, 16  ;;  %v220_v13 = vshll.u32 %v199_v9, 16  ;;  %v234_v16 = vshll.u32 %v200_v10, 16 }
  0x1e   : > { %1136 = vmatprep.mubr.msk.bf16.mxu0 %vm343_vm0, %v1236_v6  ;;  %v225_v14 = vshrl.u32 %v1433_v8, 16  ;;  %1141 = vmatpush3.bf16.msra.mxu0 %v1239_v3  ;;  %v228_v15 = vshll.u32 %v1433_v8, 16  ;;  %v1238_v21 = vld [vmem:[%s1422_s11 + $0x38] ss:$8 sps:$4 sm:$0xff]   ;;  %v1444_v24 = vld [vmem:[%s1422_s11 + $0x10] sm:$0xf] }
  0x1f   : > { %v213_v17 = vrot.slane %v211_v11, 4  ;;  %v216_v18 = vrot.slane %v214_v12, 5  ;;  %v222_v19 = vrot.slane %v220_v13, 5  ;;  %v236_v23 = vrot.slane %v234_v16, 5  ;;  %v1447_v25 = vld [vmem:[%s1422_s11 + $0x18] sm:$0xf] }
  0x20   : > { %v227_v20 = vrot.slane %v225_v14, 4  ;;  %v230_v22 = vrot.slane %v228_v15, 5  ;;  %v201_v27 = vld [vmem:[%s1422_s11 + $0x14] sm:$0x1]  ;;  %v202_v28 = vld [vmem:[%s1422_s11 + $0x1c] sm:$0x1] }
  0x21   : > { %v217_v26 = vor.u32 %v216_v18, %v213_v17  ;;  %v239_v29 = vshrl.u32 %v1444_v24, 16  ;;  %v242_v30 = vshll.u32 %v1444_v24, 16  ;;  %v248_v33 = vshll.u32 %v201_v27, 16  ;;  %v1056_v36 = vld [vmem:[%s1422_s11 + $0x8] sm:$0xf]  ;;  %s1248_s7 = sshll.u32 %s1324_s6, 4  ;;  %s1249_s7 = int_to_ptr.vmem [resolvable:$false] %s1248_s7 }
  0x22   : > { %v231_v32 = vor.u32 %v230_v22, %v227_v20  ;;  %v253_v34 = vshrl.u32 %v1447_v25, 16  ;;  %v256_v35 = vshll.u32 %v1447_v25, 16  ;;  %v262_v40 = vshll.u32 %v202_v28, 16  ;;  %v1057_v41 = vld [vmem:[%s1422_s11 + $0xc] sm:$0x1]  ;;  %s1250_s8 = scalar_lea.vmem %s1249_s7, 2048  ;;  %p1251_p1 = scmp.lt.s32.totalorder %s1567_s28, %s1249_s7 }
  0x23   : > { %v218_v37 = vrot.slane %v217_v26, 4  ;;  %v241_v38 = vrot.slane %v239_v29, 4  ;;  %v244_v39 = vrot.slane %v242_v30, 5  ;;  %v250_v43 = vrot.slane %v248_v33, 5  ;;  %v1058_v46 = vld [vmem:[%s1422_s11 + $0x10] sm:$0xf]  ;;  %p1252_p2 = scmp.lt.s32.totalorder %s1250_s8, %s1244_s5 }
  0x24   : > { %v232_v42 = vrot.slane %v231_v32, 4  ;;  %v255_v44 = vrot.slane %v253_v34, 4  ;;  %v258_v45 = vrot.slane %v256_v35, 5  ;;  %v264_v49 = vrot.slane %v262_v40, 5  ;;  %v1059_v53 = vld [vmem:[%s1422_s11 + $0x14] sm:$0x1] }
  0x25   : > { %1137 = vmatmul.mubr.msk.bf16.gmra.mrb[4].mxu0 %vm343_vm0, %v1238_v21  ;;  %v223_v47 = vsel %vm1455_vm3, %v218_v37, %v222_v19  ;;  %v245_v48 = vor.u32 %v244_v39, %v241_v38  ;;  %v667_v50 = vshrl.u32 %v1056_v36, 16  ;;  %v670_v54 = vshll.u32 %v1056_v36, 16  ;;  %v1471_v56 = vld [vmem:[%s1422_s11 + $0x20] sm:$0xf]  ;;  %v203_v1 = vld [vmem:[%s1422_s11 + $0x24] sm:$0x1]  ;;  %p1253_p3 = por %p1252_p2, %p1251_p1 }
  0x26   : > { %v237_v51 = vsel %vm1455_vm3, %v232_v42, %v236_v23  ;;  %v259_v52 = vor.u32 %v258_v45, %v255_v44  ;;  %v676_v55 = vshll.u32 %v1057_v41, 16  ;;  %v681_v60 = vshrl.u32 %v1058_v46, 16  ;;  %v1478_v6 = vld [vmem:[%s1422_s11 + $0x28] sm:$0xf]  ;;  %v204_v13 = vld [vmem:[%s1422_s11 + $0x2c] sm:$0x1] }
  0x27   : > { %v1019_v57 = vcombine.low %v223_v47, %v237_v51  ;;  %v246_v58 = vrot.slane %v245_v48, 4  ;;  %v669_v59 = vrot.slane %v667_v50, 4  ;;  %v672_v62 = vrot.slane %v670_v54, 5  ;;  %v1060_v15 = vld [vmem:[%s1422_s11 + $0x18] sm:$0xf]  ;;  %p1254_p5 = pnand %p1253_p3, %p1247_p0 }
  0x28   : > { %v260_v61 = vrot.slane %v259_v52, 4  ;;  %v678_v63 = vrot.slane %v676_v55, 5  ;;  %v684_v0 = vshll.u32 %v1058_v46, 16  ;;  %v683_v4 = vrot.slane %v681_v60, 4  ;;  %v1061_v26 = vld [vmem:[%s1422_s11 + $0x1c] sm:$0x1] }
  0x29   : > { %1112 = vmatprep.mubr.msk.bf16.mxu1 %vm343_vm0, %v1019_v57  ;;  %v251_v3 = vsel %vm1455_vm3, %v246_v58, %v250_v43  ;;  %v690_v5 = vshll.u32 %v1059_v53, 16  ;;  %v267_v9 = vshrl.u32 %v1471_v56, 16  ;;  %v673_v11 = vor.u32 %v672_v62, %v669_v59  ;;  %v1062_v30 = vld [vmem:[%s1422_s11 + $0x20] sm:$0xf]  ;;  %v1063_v39 = vld [vmem:[%s1422_s11 + $0x24] sm:$0x1] }
  0x2a   : > { %v265_v10 = vsel %vm1455_vm3, %v260_v61, %v264_v49  ;;  %v686_v12 = vrot.slane %v684_v0, 5  ;;  %v270_v14 = vshll.u32 %v1471_v56, 16  ;;  %v276_v19 = vshll.u32 %v203_v1, 16  ;;  %v1501_v50 = vld [vmem:[%s1422_s11 + $0x38] sm:$0xf] }
  0x2b   : > { %v1020_v16 = vcombine.low %v251_v3, %v265_v10  ;;  %v692_v17 = vrot.slane %v690_v5, 5  ;;  %v269_v18 = vrot.slane %v267_v9, 4  ;;  %v674_v20 = vrot.slane %v673_v11, 4  ;;  %v205_v51 = vld [vmem:[%s1422_s11 + $0x34] sm:$0x1] }
  0x2c   : > { %v687_v21 = vor.u32 %v686_v12, %v683_v4  ;;  %v272_v22 = vrot.slane %v270_v14, 5  ;;  %v281_v23 = vshrl.u32 %v1478_v6, 16  ;;  %v278_v27 = vrot.slane %v276_v19, 5  ;;  %v206_v62 = vld [vmem:[%s1422_s11 + $0x3c] sm:$0x1] }
  0x2d   : > { %1113 = vmatmul.mubr.msk.bf16.vlgmr.msra.gmra.mrb[0].mxu1 %vm343_vm0, %v1020_v16  ;;  %v284_v28 = vshll.u32 %v1478_v6, 16  ;;  %v290_v29 = vshll.u32 %v204_v13, 16  ;;  %v695_v32 = vshrl.u32 %v1060_v15, 16  ;;  %v679_v33 = vsel %vm1455_vm3, %v674_v20, %v678_v63  ;;  %v1064_v10 = vld [vmem:[%s1422_s11 + $0x28] sm:$0xf] }
  0x2e   : > { %1121 = vmatpush3.bf16.msra.mxu1 %v1413_v2  ;;  %v688_v34 = vrot.slane %v687_v21, 4  ;;  %v273_v35 = vor.u32 %v272_v22, %v269_v18  ;;  %v283_v36 = vrot.slane %v281_v23, 4  ;;  %v698_v41 = vshll.u32 %v1060_v15, 16  ;;  %v1498_v2 = vld [vmem:[%s1422_s11 + $0x30] sm:$0xf] }
  0x2f   : > { %v286_v37 = vrot.slane %v284_v28, 5  ;;  %v292_v38 = vrot.slane %v290_v29, 5  ;;  %v697_v40 = vrot.slane %v695_v32, 4  ;;  %v704_v44 = vshll.u32 %v1061_v26, 16  ;;  %v1065_v11 = vld [vmem:[%s1422_s11 + $0x2c] sm:$0x1] }
  0x30   : > { %v693_v42 = vsel %vm1455_vm3, %v688_v34, %v692_v17  ;;  %v274_v43 = vrot.slane %v273_v35, 4  ;;  %v709_v45 = vshrl.u32 %v1062_v30, 16  ;;  %v700_v48 = vrot.slane %v698_v41, 5  ;;  %v1066_v15 = vld [vmem:[%s1422_s11 + $0x30] sm:$0xf] }
  0x31   : > { %v1074_v46 = vcombine.low %v679_v33, %v693_v42  ;;  %v287_v47 = vor.u32 %v286_v37, %v283_v36  ;;  %v712_v49 = vshll.u32 %v1062_v30, 16  ;;  %v706_v53 = vrot.slane %v704_v44, 5  ;;  %v1067_v22 = vld [vmem:[%s1422_s11 + $0x34] sm:$0x1]  ;;  %v1068_v30 = vld [vmem:[%s1422_s11 + $0x38] sm:$0xf] }
  0x32   : > { %v279_v52 = vsel %vm1455_vm3, %v274_v43, %v278_v27  ;;  %v711_v54 = vrot.slane %v709_v45, 4  ;;  %v718_v55 = vshll.u32 %v1063_v39, 16  ;;  %v701_v58 = vor.u32 %v700_v48, %v697_v40  ;;  %v1069_v36 = vld [vmem:[%s1422_s11 + $0x3c] sm:$0x1]  ;;  %v1070_v41 = vld [vmem:[%s1422_s11 + $0x40] sm:$0xf] }
  0x33   : > { %1142 = vmatprep.mubr.msk.bf16.mxu0 %vm343_vm0, %v1074_v46  ;;  %v288_v57 = vrot.slane %v287_v47, 4  ;;  %v714_v59 = vrot.slane %v712_v49, 5  ;;  %v295_v60 = vshrl.u32 %v1498_v2, 16  ;;  %v298_v63 = vshll.u32 %v1498_v2, 16 }
  0x34   : > { %v720_v61 = vrot.slane %v718_v55, 5  ;;  %v304_v0 = vshll.u32 %v205_v51, 16  ;;  %v309_v1 = vshrl.u32 %v1501_v50, 16  ;;  %v702_v4 = vrot.slane %v701_v58, 4 }
  0x35   : > { %v293_v3 = vsel %vm1455_vm3, %v288_v57, %v292_v38  ;;  %v715_v5 = vor.u32 %v714_v59, %v711_v54  ;;  %v297_v9 = vrot.slane %v295_v60, 4  ;;  %v300_v13 = vrot.slane %v298_v63, 5 }
  0x36   : > { %v1021_v12 = vcombine.low %v279_v52, %v293_v3  ;;  %v311_v14 = vrot.slane %v309_v1, 4  ;;  %v1028_v16 = vcombine.low %v1430_v7, %v1433_v8  ;;  %v707_v17 = vsel %vm1455_vm3, %v702_v4, %v706_v53  ;;  %v1071_v52 = vld [vmem:[%s1422_s11 + $0x44] sm:$0x1] }
  0x37   : > { %v716_v18 = vrot.slane %v715_v5, 4  ;;  %v312_v19 = vshll.u32 %v1501_v50, 16  ;;  %v318_v20 = vshll.u32 %v206_v62, 16  ;;  %v301_v21 = vor.u32 %v300_v13, %v297_v9 }
  0x38   : > { %1116 = vmatprep.mubr.msk.bf16.mxu1 %vm343_vm0, %v1021_v12  ;;  %v723_v23 = vshrl.u32 %v1064_v10, 16  ;;  %v726_v26 = vshll.u32 %v1064_v10, 16  ;;  %v732_v27 = vshll.u32 %v1065_v11, 16  ;;  %v306_v7 = vrot.slane %v304_v0, 5 }
  0x39   : > { %v721_v28 = vsel %vm1455_vm3, %v716_v18, %v720_v61  ;;  %v314_v8 = vrot.slane %v312_v19, 5  ;;  %v737_v29 = vshrl.u32 %v1066_v15, 16  ;;  %v302_v33 = vrot.slane %v301_v21, 4 }
  0x3a   : > { %v1075_v32 = vcombine.low %v707_v17, %v721_v28  ;;  %v725_v34 = vrot.slane %v723_v23, 4  ;;  %v728_v35 = vrot.slane %v726_v26, 5  ;;  %v320_v38 = vrot.slane %v318_v20, 5 }
  0x3b   : > { %v315_v37 = vor.u32 %v314_v8, %v311_v14  ;;  %v739_v39 = vrot.slane %v737_v29, 4  ;;  %v740_v40 = vshll.u32 %v1066_v15, 16  ;;  %v734_v43 = vrot.slane %v732_v27, 5 }
  0x3c   : > { %1143 = vmatmul.mubr.msk.bf16.vlgmr.msra.gmra.mrb[0].mxu0 %vm343_vm0, %v1075_v32  ;;  %v729_v42 = vor.u32 %v728_v35, %v725_v34  ;;  %v746_v44 = vshll.u32 %v1067_v22, 16  ;;  %v751_v45 = vshrl.u32 %v1068_v30, 16  ;;  %v307_v46 = vsel %vm1455_vm3, %v302_v33, %v306_v7 }
  0x3d   : > { %v316_v47 = vrot.slane %v315_v37, 4  ;;  %v742_v48 = vrot.slane %v740_v40, 5  ;;  %v754_v49 = vshll.u32 %v1068_v30, 16  ;;  %v760_v54 = vshll.u32 %v1069_v36, 16 }
  0x3e   : > { %v730_v51 = vrot.slane %v729_v42, 4  ;;  %v753_v53 = vrot.slane %v751_v45, 4  ;;  %v765_v55 = vshrl.u32 %v1070_v41, 16  ;;  %v748_v59 = vrot.slane %v746_v44, 5 }
  0x3f   : > { %v321_v57 = vsel %vm1455_vm3, %v316_v47, %v320_v38  ;;  %v743_v58 = vor.u32 %v742_v48, %v739_v39  ;;  %v756_v60 = vrot.slane %v754_v49, 5  ;;  %v768_v63 = vshll.u32 %v1070_v41, 16 }
  0x40   : > { %v1022_v61 = vcombine.low %v307_v46, %v321_v57  ;;  %v767_v62 = vrot.slane %v765_v55, 4  ;;  %v735_v0 = vsel %vm1455_vm3, %v730_v51, %v734_v43  ;;  %v774_v4 = vshll.u32 %v1071_v52, 16 }
  0x41   : > { %v744_v1 = vrot.slane %v743_v58, 4  ;;  %v757_v3 = vor.u32 %v756_v60, %v753_v53  ;;  %v762_v5 = vrot.slane %v760_v54, 5  ;;  %v770_v9 = vrot.slane %v768_v63, 5 }
  0x42   : > { %1117 = vmatmul.mubr.msk.bf16.gmra.mrb[4].mxu1 %vm343_vm0, %v1022_v61  ;;  %v776_v14 = vrot.slane %v774_v4, 5  ;;  %v1029_v18 = vcombine.low %v1444_v24, %v1447_v25  ;;  %v1030_v19 = vcombine.low %v1471_v56, %v1478_v6  ;;  %v1031_v21 = vcombine.low %v1498_v2, %v1501_v50  ;;  %v1083_v6 = vld [vmem:[%s1619_s2] ss:$0 sm:$0xff] }
  0x43   : > { %v749_v10 = vsel %vm1455_vm3, %v744_v1, %v748_v59  ;;  %1122 = vmatprep.mubr.msk.bf16.mxu1 %vm343_vm0, %v1028_v16  ;;  %v758_v11 = vrot.slane %v757_v3, 4  ;;  %v771_v13 = vor.u32 %v770_v9, %v767_v62 }
  0x44   : > { %v1076_v12 = vcombine.low %v735_v0, %v749_v10 }
  0x45   : > { %v763_v15 = vsel %vm1455_vm3, %v758_v11, %v762_v5  ;;  %v772_v17 = vrot.slane %v771_v13, 4 }
  0x46   : > { %1146 = vmatprep.mubr.msk.bf16.mxu0 %vm343_vm0, %v1076_v12 }
  0x47   : > { %v777_v16 = vsel %vm1455_vm3, %v772_v17, %v776_v14 }
  0x48   : > { %v1077_v20 = vcombine.low %v763_v15, %v777_v16 }
  0x4a   : > { %1123 = vmatmul.mubr.msk.bf16.vlgmr.msra.gmra.mrb[0].mxu1 %vm343_vm0, %v1029_v18  ;;  %1147 = vmatmul.mubr.msk.bf16.gmra.mrb[4].mxu0 %vm343_vm0, %v1077_v20 }
  0x4b   : > { %1126 = vmatprep.mubr.msk.bf16.mxu1 %vm343_vm0, %v1030_v19 }
  0x52   : > { %1127 = vmatmul.mubr.msk.bf16.gmra.mrb[4].mxu1 %vm343_vm0, %v1031_v21 }
 0x10f   : > { %v1144_v24 = vpop.f32.mrb[0].mxu0 }
 0x110   : > { %v845_v25 = vpop.f32.mrb[1].mxu0 }
 0x111   : > { %v1145_v22 = vpop.f32.mrb[2].mxu0 }
 0x112   : > { %v848_v56 = vpop.f32.mrb[3].mxu0 }
 0x11d   : > { %v1124_v31 = vpop.f32.mrb[0].mxu1  ;;  %v1148_v23 = vpop.f32.mrb[4].mxu0 }
 0x11e   : > { %v1150_v26 = vadd.f32 %v1144_v24, %v1124_v31  ;;  %v493_v27 = vpop.f32.mrb[1].mxu1  ;;  %v861_v28 = vpop.f32.mrb[5].mxu0 }
 0x11f   : > { %v1151_v7 = vadd.f32 %v845_v25, %v493_v27  ;;  %v1125_v2 = vpop.f32.mrb[2].mxu1  ;;  %v1149_v8 = vpop.f32.mrb[6].mxu0 }
 0x120   : > { %v893_v50 = vadd.f32 %v1150_v26, %v1083_v6  ;;  %v1152_v29 = vadd.f32 %v1145_v22, %v1125_v2  ;;  %v496_v30 = vpop.f32.mrb[3].mxu1  ;;  %v864_v33 = vpop.f32.mrb[7].mxu0 }
 0x121   : > { %v891_v32 = vadd.f32 %v1151_v7, %v1083_v6  ;;  %v1153_v34 = vadd.f32 %v848_v56, %v496_v30 }
 0x122   : > { %v901_v35 = vmax.f32 %v893_v50, 0.0  ;;  %v894_v36 = vadd.f32 %v1152_v29, %v1083_v6 }
 0x123   : > { %v899_v37 = vmax.f32 %v891_v32, 0.0  ;;  %v892_v38 = vadd.f32 %v1153_v34, %v1083_v6 }
 0x124   : > { %909 = vst [vmem:[%s177_s26 + $0x10] sm:$0xff] %v901_v35  ;;  %v902_v39 = vmax.f32 %v894_v36, 0.0 }
 0x125   : > { %907 = vst [vmem:[%s177_s26] sm:$0xff] %v899_v37  ;;  %v900_v40 = vmax.f32 %v892_v38, 0.0  ;;  %v1128_v41 = vpop.f32.mrb[4].mxu1 }
 0x126   : > { %910 = vst [vmem:[%s177_s26 + $0x18] sm:$0xff] %v902_v39  ;;  %v1154_v42 = vadd.f32 %v1148_v23, %v1128_v41  ;;  %v509_v43 = vpop.f32.mrb[5].mxu1 }
 0x127   : > { %908 = vst [vmem:[%s177_s26 + $0x8] sm:$0xff] %v900_v40  ;;  %v1155_v44 = vadd.f32 %v861_v28, %v509_v43  ;;  %v1129_v45 = vpop.f32.mrb[6].mxu1 }
 0x128   : > { %v897_v46 = vadd.f32 %v1154_v42, %v1083_v6  ;;  %v1156_v47 = vadd.f32 %v1149_v8, %v1129_v45  ;;  %v512_v48 = vpop.f32.mrb[7].mxu1 }
 0x129   : > { %v895_v49 = vadd.f32 %v1155_v44, %v1083_v6  ;;  %v1157_v51 = vadd.f32 %v864_v33, %v512_v48 }
 0x12a   : > { %v905_v52 = vmax.f32 %v897_v46, 0.0  ;;  %v898_v53 = vadd.f32 %v1156_v47, %v1083_v6 }
 0x12b   : > { %v903_v54 = vmax.f32 %v895_v49, 0.0  ;;  %v896_v55 = vadd.f32 %v1157_v51, %v1083_v6 }
 0x12c   : > { %913 = vst [vmem:[%s177_s26 + $0x30] sm:$0xff] %v905_v52  ;;  %v906_v57 = vmax.f32 %v898_v53, 0.0 }
 0x12d   : > { %911 = vst [vmem:[%s177_s26 + $0x20] sm:$0xff] %v903_v54  ;;  %v904_v58 = vmax.f32 %v896_v55, 0.0 }
 0x12e   : > { %914 = vst [vmem:[%s177_s26 + $0x38] sm:$0xff] %v906_v57 }
 0x12f   : > { %912 = vst [vmem:[%s177_s26 + $0x28] sm:$0xff] %v904_v58 }
 0x130   : > { %1257 = shalt.err (!%p1254_p5)
}
 0x131   : > { %s1258_s9 = scalar_lea.hbm %s1565_s4, 1024  ;;  %s1262_s18 = scalar_lea.hbm %s1620_s3, 2048 }
 0x132   : > { %p1259_p6 = scmp.ne.s32.totalorder %s1565_s4, %s1258_s9  ;;  %p1263_p10 = scmp.lt.u32.totalorder %s1565_s4, %s1620_s3 }
 0x133   : > { %p1264_p11 = scmp.lt.u32.totalorder %s1262_s18, %s1258_s9  ;;  %p1266_p13 = scmp.lt.u32.totalorder %s1258_s9, %s1565_s4 }
 0x134   : > { %p1260_p7 = pnand %p1259_p6, %p1387_p4 }
 0x135   : > { %p1265_p12 = por %p1264_p11, %p1263_p10 }
 0x136   : > { %p1261_p9 = pneg %p1260_p7 }
 0x137   : > { %p1267_p0 = por %p1266_p13, %p1265_p12 }
 0x139   : > { %p1268_p1 = pnand %p1267_p0, %p1261_p9 }
 0x13b   : > { %1271 = shalt.err (!%p1268_p1)
}
 0x13c   : > { %s1325_s23 = smov 128   ;;  %s1326_s26 = smov 8  }
 0x13d   : > { %1175 = dma.vmem_to_hbm [thread:$0]  (%p1387_p4), %s1567_s28, 1024, %s1565_s4, %s1571_s15, %s1325_s23, %s1325_s23, %s1326_s26  }
 0x13e PF: > { %p1181_p2 = scmp.ge.s32.totalorder %s1322_s17, 2  ;;  %s946_s27 = sand.u32 1, %s1302_s12  }
 0x13f   : > { %s947_s29 = scalar_lea.sflag [#allocation3], %s946_s27 }
 0x140   : > { %p1178_p3 = pnand %p1181_p2, %p1394_p8 }
 0x142   : > { %1297 = dma.done.wait (!%p1178_p3), %s947_s29, 1024  }
 0x143   : > { %1299 = vsyncadd (!%p1178_p3), %s947_s29, 4294966272  ;;  %s16_s17 = sadd.s32 1, %s1322_s17   ;;  %s1625_s12 = smov %s1306_s13 }
 0x144   : > { %p13_p5 = scmp.ge.s32.totalorder %s16_s17, 4   ;;  %s1626_s13 = smov %s1310_s14 }
 0x145   : > { %s1627_s14 = smov %s1400_s25  ;;  %s1628_s15 = smov %s1318_s16 }
 0x146   : > { %s1629_s16 = smov %s1631_s20  ;;  %15 = sbr.rel (!%p13_p5) target bundleno = 4 (0x4), region = 72 }
 0x14d   :  { %952 = vsyncpa [#allocation3], 1 }
 0x14e   :  { %954 = vsyncpa [#allocation3 + $0x1], 1 }

</bundles_post_ra>
